<compile_context>
chip_gen: v5e
topology: v5e:2x2
jax: 0.10.0
libtpu: 0.0.40
codegen_flags: <defaults>
</compile_context>

<pallas_src>
import functools

import jax
import jax.numpy as jnp
import numpy as np
from jax.experimental import pallas as pl
from jax.experimental.pallas import tpu as pltpu


def _round_up(x, m):
    return ((int(x) + m - 1) // m) * m


# ==========================================================================
# GEMM (+ bias + folded-BN + activation) on the MXU
# ==========================================================================
def _mm_kernel(a_ref, b_ref, bias_ref, o_ref, acc_ref, *, act):
    @pl.when(pl.program_id(2) == 0)
    def _():
        acc_ref[...] = jnp.zeros_like(acc_ref)

    acc_ref[...] += jnp.dot(a_ref[...], b_ref[...],
                            preferred_element_type=jnp.float32)

    @pl.when(pl.program_id(2) == pl.num_programs(2) - 1)
    def _():
        y = acc_ref[...] + bias_ref[...]
        if act == "relu":
            y = jnp.maximum(y, 0.0)
        elif act == "sigmoid":
            y = jax.nn.sigmoid(y)
        o_ref[...] = y.astype(o_ref.dtype)


def _pick_tk(K):
    # Largest of (512, 256) whose zero-padding waste is <= 12.5%, else 128.
    for tk in (512, 256):
        if K >= tk and (_round_up(K, tk) - K) * 8 <= K:
            return tk
    return 128


@functools.partial(jax.jit, static_argnames=("act", "out_dtype"))
def matmul_bias_act(a, b, bias=None, act="none", out_dtype=jnp.bfloat16):
    """(M,K) @ (K,N) + bias (+ fused activation); bf16 operands, f32 accum."""
    M, K = a.shape
    K2, N = b.shape
    assert K == K2
    if bias is None:
        bias = jnp.zeros((N,), jnp.float32)
    TM = 512 if M >= 512 else _round_up(M, 8)
    TN = 256 if N > 128 else 128
    TK = _pick_tk(K)
    Mp, Kp, Np = _round_up(M, TM), _round_up(K, TK), _round_up(N, TN)
    a_p = jnp.pad(a.astype(jnp.bfloat16), ((0, Mp - M), (0, Kp - K)))
    b_p = jnp.pad(b.astype(jnp.bfloat16), ((0, Kp - K), (0, Np - N)))
    bias_p = jnp.pad(bias.astype(jnp.float32), (0, Np - N)).reshape(1, Np)
    grid = (Mp // TM, Np // TN, Kp // TK)
    out = pl.pallas_call(
        functools.partial(_mm_kernel, act=act),
        out_shape=jax.ShapeDtypeStruct((Mp, Np), out_dtype),
        grid_spec=pltpu.PrefetchScalarGridSpec(
            num_scalar_prefetch=0,
            grid=grid,
            in_specs=[
                pl.BlockSpec((TM, TK), lambda i, j, k: (i, k)),
                pl.BlockSpec((TK, TN), lambda i, j, k: (k, j)),
                # bias index is constant along k -> Pallas elides the re-copy.
                pl.BlockSpec((1, TN), lambda i, j, k: (0, j)),
            ],
            out_specs=pl.BlockSpec((TM, TN), lambda i, j, k: (i, j)),
            scratch_shapes=[pltpu.VMEM((TM, TN), jnp.float32)],
        ),
        compiler_params=pltpu.CompilerParams(
            dimension_semantics=("parallel", "parallel", "arbitrary")),
    )(a_p, b_p, bias_p)
    return out[:M, :N]


# ==========================================================================
# Tiled elementwise binary kernel (same-shape operands)
# ==========================================================================
_EW_LANE = 512


def _ew_kernel(a_ref, b_ref, o_ref, *, op):
    a = a_ref[...].astype(jnp.float32)
    b = b_ref[...].astype(jnp.float32)
    if op == "add_relu":
        y = jnp.maximum(a + b, 0.0)
    elif op == "add":
        y = a + b
    else:
        y = a * b
    o_ref[...] = y.astype(o_ref.dtype)


@functools.partial(jax.jit, static_argnames=("op", "out_dtype"))
def ew_binary(a, b, op, out_dtype=jnp.bfloat16):
    shape = a.shape
    af = a.reshape(-1)
    bf = b.reshape(-1)
    L = af.shape[0]
    R = (L + _EW_LANE - 1) // _EW_LANE
    TR = min(256, _round_up(R, 8))
    Rp = _round_up(R, TR)
    Lp = Rp * _EW_LANE
    ap = jnp.pad(af, (0, Lp - L)).reshape(Rp, _EW_LANE)
    bp = jnp.pad(bf, (0, Lp - L)).reshape(Rp, _EW_LANE)
    out = pl.pallas_call(
        functools.partial(_ew_kernel, op=op),
        out_shape=jax.ShapeDtypeStruct((Rp, _EW_LANE), out_dtype),
        grid=(Rp // TR,),
        in_specs=[pl.BlockSpec((TR, _EW_LANE), lambda i: (i, 0)),
                  pl.BlockSpec((TR, _EW_LANE), lambda i: (i, 0))],
        out_specs=pl.BlockSpec((TR, _EW_LANE), lambda i: (i, 0)),
        compiler_params=pltpu.CompilerParams(
            dimension_semantics=("parallel",)),
    )(ap, bp)
    return out.reshape(-1)[:L].reshape(shape)


# ==========================================================================
# Gating multiply with in-kernel broadcast (no materialized broadcast_to)
# ==========================================================================
def _gate_mul_kernel(x_ref, g_ref, o_ref):
    o_ref[...] = (x_ref[...].astype(jnp.float32) *
                  g_ref[...].astype(jnp.float32)).astype(o_ref.dtype)


@functools.partial(jax.jit, static_argnames=("kind", "out_dtype"))
def gate_mul(x, g, kind, out_dtype=jnp.bfloat16):
    """x: (N,S,C).  g: (N,1,C) if kind=='channel' else (N,S,1)."""
    N, S, C = x.shape
    TS = min(512, _round_up(S, 8))
    Sp = _round_up(S, TS)
    xp = jnp.pad(x, ((0, 0), (0, Sp - S), (0, 0)))
    if kind == "channel":
        gp = g
        g_spec = pl.BlockSpec((1, 1, C), lambda n, s: (n, 0, 0))
    else:
        gp = jnp.pad(g, ((0, 0), (0, Sp - S), (0, 0)))
        g_spec = pl.BlockSpec((1, TS, 1), lambda n, s: (n, s, 0))
    out = pl.pallas_call(
        _gate_mul_kernel,
        out_shape=jax.ShapeDtypeStruct((N, Sp, C), out_dtype),
        grid=(N, Sp // TS),
        in_specs=[pl.BlockSpec((1, TS, C), lambda n, s: (n, s, 0)), g_spec],
        out_specs=pl.BlockSpec((1, TS, C), lambda n, s: (n, s, 0)),
        compiler_params=pltpu.CompilerParams(
            dimension_semantics=("parallel", "parallel")),
    )(xp, gp)
    return out[:, :S, :]


# ==========================================================================
# PSA attention reductions (batched, no per-sample GEMM padded to 128)
# ==========================================================================
def _chpool_kernel(v_ref, q_ref, o_ref):
    @pl.when(pl.program_id(1) == 0)
    def _():
        o_ref[...] = jnp.zeros_like(o_ref)
    v = v_ref[...].astype(jnp.float32)
    q = q_ref[...].astype(jnp.float32)
    o_ref[...] += jnp.sum(v * q, axis=1, keepdims=True)


@jax.jit
def channel_pool(v, q):
    """z[n,0,c] = sum_s v[n,s,c] * q[n,s,0].  Returns (N,1,C) f32."""
    N, S, C = v.shape
    TS = min(512, _round_up(S, 8))
    Sp = _round_up(S, TS)
    vp = jnp.pad(v, ((0, 0), (0, Sp - S), (0, 0)))
    qp = jnp.pad(q, ((0, 0), (0, Sp - S), (0, 0)))
    return pl.pallas_call(
        _chpool_kernel,
        out_shape=jax.ShapeDtypeStruct((N, 1, C), jnp.float32),
        grid=(N, Sp // TS),
        in_specs=[pl.BlockSpec((1, TS, C), lambda n, s: (n, s, 0)),
                  pl.BlockSpec((1, TS, 1), lambda n, s: (n, s, 0))],
        out_specs=pl.BlockSpec((1, 1, C), lambda n, s: (n, 0, 0)),
        compiler_params=pltpu.CompilerParams(
            dimension_semantics=("parallel", "arbitrary")),
    )(vp, qp)


def _sppool_kernel(v_ref, q_ref, o_ref):
    v = v_ref[...].astype(jnp.float32)
    q = q_ref[...].astype(jnp.float32)
    o_ref[...] = jax.nn.sigmoid(jnp.sum(v * q, axis=-1, keepdims=True))


@jax.jit
def spatial_pool_sigmoid(v, q):
    """a[n,s,0] = sigmoid(sum_c v[n,s,c] * q[n,0,c]).  Returns (N,S,1) f32."""
    N, S, C = v.shape
    TS = min(512, _round_up(S, 8))
    Sp = _round_up(S, TS)
    vp = jnp.pad(v, ((0, 0), (0, Sp - S), (0, 0)))
    out = pl.pallas_call(
        _sppool_kernel,
        out_shape=jax.ShapeDtypeStruct((N, Sp, 1), jnp.float32),
        grid=(N, Sp // TS),
        in_specs=[pl.BlockSpec((1, TS, C), lambda n, s: (n, s, 0)),
                  pl.BlockSpec((1, 1, C), lambda n, s: (n, 0, 0))],
        out_specs=pl.BlockSpec((1, TS, 1), lambda n, s: (n, s, 0)),
        compiler_params=pltpu.CompilerParams(
            dimension_semantics=("parallel", "parallel")),
    )(vp, q)
    return out[:, :S, :]


# ==========================================================================
# Tiled two-pass row softmax (online max/sum, then normalize)
# ==========================================================================
_NEG = -1e30


def _softmax_stats_kernel(x_ref, m_ref, l_ref):
    @pl.when(pl.program_id(1) == 0)
    def _():
        m_ref[...] = jnp.zeros_like(m_ref) + _NEG
        l_ref[...] = jnp.zeros_like(l_ref)
    x = x_ref[...]
    m_prev = m_ref[...]
    m_new = jnp.maximum(m_prev, jnp.max(x, axis=-1, keepdims=True))
    l_ref[...] = (l_ref[...] * jnp.exp(m_prev - m_new) +
                  jnp.sum(jnp.exp(x - m_new), axis=-1, keepdims=True))
    m_ref[...] = m_new


def _softmax_norm_kernel(x_ref, m_ref, l_ref, o_ref):
    inv = 1.0 / jnp.maximum(l_ref[...], 1e-30)
    o_ref[...] = jnp.exp(x_ref[...] - m_ref[...]) * inv


@jax.jit
def pallas_softmax(x):
    """Row-wise softmax over the last axis of a 2D array (tiled, 2-pass)."""
    R, C = x.shape
    TR = min(256, _round_up(R, 8))
    TC = min(512, _round_up(C, 128))
    Rp, Cp = _round_up(R, TR), _round_up(C, TC)
    xp = jnp.pad(x.astype(jnp.float32), ((0, Rp - R), (0, Cp - C)),
                 constant_values=_NEG)
    grid = (Rp // TR, Cp // TC)
    m, l = pl.pallas_call(
        _softmax_stats_kernel,
        out_shape=(jax.ShapeDtypeStruct((Rp, 1), jnp.float32),
                   jax.ShapeDtypeStruct((Rp, 1), jnp.float32)),
        grid=grid,
        in_specs=[pl.BlockSpec((TR, TC), lambda i, j: (i, j))],
        out_specs=(pl.BlockSpec((TR, 1), lambda i, j: (i, 0)),
                   pl.BlockSpec((TR, 1), lambda i, j: (i, 0))),
        compiler_params=pltpu.CompilerParams(
            dimension_semantics=("parallel", "arbitrary")),
    )(xp)
    out = pl.pallas_call(
        _softmax_norm_kernel,
        out_shape=jax.ShapeDtypeStruct((Rp, Cp), jnp.float32),
        grid=grid,
        in_specs=[pl.BlockSpec((TR, TC), lambda i, j: (i, j)),
                  pl.BlockSpec((TR, 1), lambda i, j: (i, 0)),
                  pl.BlockSpec((TR, 1), lambda i, j: (i, 0))],
        out_specs=pl.BlockSpec((TR, TC), lambda i, j: (i, j)),
        compiler_params=pltpu.CompilerParams(
            dimension_semantics=("parallel", "parallel")),
    )(xp, m, l)
    return out[:R, :C]


# ==========================================================================
# Conv3d (NDHWC) via shifted-slice im2col + Pallas GEMM; BN folding; glue
# ==========================================================================
def conv3d(x, w, b=None, stride=1, padding=0, act="none",
           out_dtype=jnp.bfloat16):
    """x: (N,D,H,W,Cin);  w: (Cout,Cin,kd,kh,kw) (PyTorch layout)."""
    N, D, H, W, Cin = x.shape
    Cout, Cin2, kd, kh, kw = w.shape
    assert Cin == Cin2
    s = stride
    Do = (D + 2 * padding - kd) // s + 1
    Ho = (H + 2 * padding - kh) // s + 1
    Wo = (W + 2 * padding - kw) // s + 1
    if kd == kh == kw == 1 and s == 1 and padding == 0:
        A = x.reshape(N * D * H * W, Cin)
        B = w.reshape(Cout, Cin).T
    else:
        xp = jnp.pad(x, ((0, 0), (padding, padding), (padding, padding),
                         (padding, padding), (0, 0)))
        # TODO(synk): the im2col slab is still materialized in HBM (but
        # channel-last, so lane-dense and transpose-free); fully fusing the
        # k^3 tap loop into the GEMM kernel (manual DMA of halo tiles) would
        # also remove the k^3 read amplification.
        cols = []
        for a in range(kd):
            for bb in range(kh):
                for c in range(kw):
                    cols.append(xp[:, a:a + s * (Do - 1) + 1:s,
                                   bb:bb + s * (Ho - 1) + 1:s,
                                   c:c + s * (Wo - 1) + 1:s, :])
        A = jnp.concatenate(cols, axis=-1).reshape(
            N * Do * Ho * Wo, kd * kh * kw * Cin)
        B = jnp.transpose(w, (2, 3, 4, 1, 0)).reshape(kd * kh * kw * Cin, Cout)
    y = matmul_bias_act(A, B, b, act=act, out_dtype=out_dtype)
    return y.reshape(N, Do, Ho, Wo, Cout)


def fold_bn(w, b, bn, eps=1e-5):
    scale = bn["gamma"] / jnp.sqrt(bn["var"] + eps)
    wf = w * scale[:, None, None, None, None]
    b0 = jnp.zeros((w.shape[0],), jnp.float32) if b is None else b
    bf = (b0 - bn["mean"]) * scale + bn["beta"]
    return wf, bf


def avg_pool3d(x, k):
    if k == 1:
        return x
    N, D, H, W, C = x.shape
    return x.reshape(N, D // k, k, H // k, k, W // k, k, C).mean(
        axis=(2, 4, 6)).astype(x.dtype)


def upsample_nearest2(x):
    # nn.Upsample(scale_factor=2), default mode='nearest' (NDHWC layout)
    x = jnp.repeat(x, 2, axis=1)
    x = jnp.repeat(x, 2, axis=2)
    x = jnp.repeat(x, 2, axis=3)
    return x


# ==========================================================================
# Parameter initialization (deterministic, synthetic)
# ==========================================================================
class KeyGen:
    def __init__(self, key):
        self.key = key
        self.i = 0

    def __call__(self):
        self.i += 1
        return jax.random.fold_in(self.key, self.i)


def init_conv(kg, cout, cin, k, bias=True):
    fan_in = cin * k * k * k
    w = jax.random.normal(kg(), (cout, cin, k, k, k), jnp.float32) / np.sqrt(fan_in)
    b = jnp.zeros((cout,), jnp.float32) if bias else None
    return {"w": w, "b": b}


def init_bn(c):
    return {"gamma": jnp.ones((c,), jnp.float32), "beta": jnp.zeros((c,), jnp.float32),
            "mean": jnp.zeros((c,), jnp.float32), "var": jnp.ones((c,), jnp.float32)}


def init_cbr(kg, cin, cout, k):
    return {"conv": init_conv(kg, cout, cin, k), "bn": init_bn(cout)}


def apply_cbr(p, x, stride=1, padding=1, act="relu"):
    w, b = fold_bn(p["conv"]["w"], p["conv"]["b"], p["bn"])
    return conv3d(x, w, b, stride=stride, padding=padding, act=act)


def init_psa(kg, C, Ci):
    return {"ch_wq": init_conv(kg, 1, C, 1), "ch_wv": init_conv(kg, Ci, C, 1),
            "ch_wz": init_conv(kg, C, Ci, 1), "sp_wq": init_conv(kg, Ci, C, 1),
            "sp_wv": init_conv(kg, Ci, C, 1)}


def apply_psa(p, f):
    """Polarized channel + spatial self-attention on f (N,D,H,W,C)."""
    N, D, H, W, C = f.shape
    S = D * H * W
    Ci = p["ch_wv"]["w"].shape[0]
    # ---- channel branch ----
    q = conv3d(f, p["ch_wq"]["w"], p["ch_wq"]["b"], out_dtype=jnp.float32)
    v = conv3d(f, p["ch_wv"]["w"], p["ch_wv"]["b"])
    q_sm = pallas_softmax(q.reshape(N, S))                      # softmax over voxels
    z = channel_pool(v.reshape(N, S, Ci), q_sm.reshape(N, S, 1))  # (N,1,Ci)
    a_ch = conv3d(z.reshape(N, 1, 1, 1, Ci), p["ch_wz"]["w"], p["ch_wz"]["b"],
                  act="sigmoid", out_dtype=jnp.float32)         # (N,1,1,1,C)
    f_ch = gate_mul(f.reshape(N, S, C), a_ch.reshape(N, 1, C), "channel")
    f_ch = f_ch.reshape(N, D, H, W, C)
    # ---- spatial branch ----
    q2 = conv3d(f_ch, p["sp_wq"]["w"], p["sp_wq"]["b"])
    v2 = conv3d(f_ch, p["sp_wv"]["w"], p["sp_wv"]["b"])
    q2g = q2.reshape(N, S, Ci).astype(jnp.float32).mean(axis=1)  # global avg pool
    q2_sm = pallas_softmax(q2g)                                  # softmax over channels
    a_sp = spatial_pool_sigmoid(v2.reshape(N, S, Ci), q2_sm.reshape(N, 1, Ci))
    out = gate_mul(f_ch.reshape(N, S, C), a_sp, "spatial")
    return out.reshape(N, D, H, W, C)


# TODO(synk): exact DenseConvWithLocalPMFSBlock source was not provided;
# reconstructed as a dense conv stack + local polarized self-attention.
def init_local_block(kg, cin, cout):
    g = cout // 2
    return {"c1": init_cbr(kg, cin, g, 3),
            "c2": init_cbr(kg, cin + g, g, 3),
            "fuse": init_cbr(kg, cin + 2 * g, cout, 1),
            "psa": init_psa(kg, cout, cout // 2)}


def apply_local_block(p, x):
    y1 = apply_cbr(p["c1"], x, 1, 1)
    y2 = apply_cbr(p["c2"], jnp.concatenate([x, y1], axis=-1), 1, 1)
    f = apply_cbr(p["fuse"], jnp.concatenate([x, y1, y2], axis=-1), 1, 0)
    return apply_psa(p["psa"], f)


# TODO(synk): exact GlobalPMFSBlock_AP source was not provided; reconstructed as
# multi-scale avg-pool unification + 1x1 branch convs + polarized self-attention.
def init_global_block(kg, in_chs, ch, ch_k, ch_v, ch_each, br):
    assert len(in_chs) == br and ch_each * br == ch
    return {"branch": [init_conv(kg, ch_each, c, 1) for c in in_chs],
            "psa": init_psa(kg, ch, ch_k),
            "out": init_conv(kg, ch, ch, 1)}


def apply_global_block(p, xs):
    base = xs[0].shape[1]
    feats = []
    for bp, xi in zip(p["branch"], xs):
        k = xi.shape[1] // base
        feats.append(conv3d(avg_pool3d(xi, k), bp["w"], bp["b"]))
    F = jnp.concatenate(feats, axis=-1)
    F2 = apply_psa(p["psa"], F)
    return conv3d(F2, p["out"]["w"], p["out"]["b"])


def init_upconv(kg, cin, cout):
    return {"cbr": init_cbr(kg, cin, cout, 3)}


def apply_upconv(p, x):
    return apply_cbr(p["cbr"], upsample_nearest2(x), 1, 1)


# TODO(synk): GridAttentionGate3d source not provided; reconstructed as the
# canonical 3D grid-attention gate (theta stride-2, phi/psi 1x1, W=conv+BN).
def init_att(kg, F_l, F_g, F_int):
    return {"theta": init_conv(kg, F_int, F_l, 2, bias=False),
            "phi": init_conv(kg, F_int, F_g, 1),
            "psi": init_conv(kg, 1, F_int, 1),
            "W_conv": init_conv(kg, F_l, F_l, 1),
            "W_bn": init_bn(F_l)}


def apply_att(p, x, g):
    tx = conv3d(x, p["theta"]["w"], None, stride=2, padding=0)
    pg = conv3d(g, p["phi"]["w"], p["phi"]["b"])
    if pg.shape[1:4] != tx.shape[1:4]:
        pg = jax.image.resize(pg.astype(jnp.float32),
                              (pg.shape[0],) + tx.shape[1:4] + (pg.shape[-1],),
                              method="trilinear").astype(pg.dtype)
    f = ew_binary(tx, pg, "add_relu")
    s = conv3d(f, p["psi"]["w"], p["psi"]["b"], act="sigmoid",
               out_dtype=jnp.float32)                           # (N,d,h,w,1)
    N, D, H, W, C = x.shape
    s_up = jax.image.resize(s, (N, D, H, W, 1), method="trilinear")
    y = gate_mul(x.reshape(N, D * H * W, C), s_up.reshape(N, D * H * W, 1),
                 "spatial").reshape(N, D, H, W, C)
    w_, b_ = fold_bn(p["W_conv"]["w"], p["W_conv"]["b"], p["W_bn"])
    return conv3d(y, w_, b_), s_up


# ==========================================================================
# PMFSNet
# ==========================================================================
def init_pmfsnet(key, in_channels=1, out_channels=35):
    kg = KeyGen(key)
    p = {}
    p["Local1"] = init_local_block(kg, in_channels, 32)
    p["down1"] = init_conv(kg, 32, 32, 3)
    p["Local2"] = init_local_block(kg, 32, 64)
    p["down2"] = init_conv(kg, 64, 64, 3)
    p["Local3"] = init_local_block(kg, 64, 128)
    p["down3"] = init_conv(kg, 128, 128, 3)
    p["Local4"] = init_local_block(kg, 128, 256)
    p["Global"] = init_global_block(kg, [256, 128, 64, 32],
                                    ch=256, ch_k=128, ch_v=64, ch_each=64, br=4)
    p["Up3"] = init_upconv(kg, 256, 128)
    p["Att3"] = init_att(kg, 128, 256, 64)
    p["Up_Local3"] = init_local_block(kg, 256, 128)
    p["Up2"] = init_upconv(kg, 128, 64)
    p["Att2"] = init_att(kg, 64, 128, 32)
    p["Up_Local2"] = init_local_block(kg, 128, 64)
    p["Up1"] = init_upconv(kg, 64, 32)
    p["Att1"] = init_att(kg, 32, 64, 16)
    p["Up_Local1"] = init_local_block(kg, 64, 32)
    p["Conv_1x1"] = init_conv(kg, out_channels, 32, 1)
    return p


def pmfsnet_forward(p, x):
    # NCDHW (PyTorch) -> NDHWC (lane-dense channels), bf16 activations.
    x = jnp.transpose(x, (0, 2, 3, 4, 1)).astype(jnp.bfloat16)

    x1 = apply_local_block(p["Local1"], x)
    x2 = conv3d(x1, p["down1"]["w"], p["down1"]["b"], stride=2, padding=1)
    x2 = apply_local_block(p["Local2"], x2)
    x3 = conv3d(x2, p["down2"]["w"], p["down2"]["b"], stride=2, padding=1)
    x3 = apply_local_block(p["Local3"], x3)
    x4 = conv3d(x3, p["down3"]["w"], p["down3"]["b"], stride=2, padding=1)
    x4 = apply_local_block(p["Local4"], x4)

    d4 = apply_global_block(p["Global"], [x4, x3, x2, x1])

    d3 = apply_upconv(p["Up3"], d4)
    x3a = apply_att(p["Att3"], x3, d4)[0]
    d3 = jnp.concatenate([x3a, d3], axis=-1)
    d3 = apply_local_block(p["Up_Local3"], d3)

    d2 = apply_upconv(p["Up2"], d3)
    x2a = apply_att(p["Att2"], x2, d3)[0]
    d2 = jnp.concatenate([x2a, d2], axis=-1)
    d2 = apply_local_block(p["Up_Local2"], d2)

    d1 = apply_upconv(p["Up1"], d2)
    x1a = apply_att(p["Att1"], x1, d2)[0]
    d1 = jnp.concatenate([x1a, d1], axis=-1)
    d1 = apply_local_block(p["Up_Local1"], d1)

    out = conv3d(d1, p["Conv_1x1"]["w"], p["Conv_1x1"]["b"],
                 out_dtype=jnp.float32)
    return jnp.transpose(out, (0, 4, 1, 2, 3))   # back to NCDHW


if __name__ == "__main__":
    key = jax.random.PRNGKey(0)
    params = init_pmfsnet(jax.random.fold_in(key, 123), in_channels=1, out_channels=35)
    x = jax.random.normal(jax.random.fold_in(key, 7), (1, 1, 16, 16, 16), jnp.float32)
    out = pmfsnet_forward(params, x)
    out = jax.block_until_ready(out)
    assert out.shape == (1, 35, 16, 16, 16), out.shape
    assert bool(jnp.all(jnp.isfinite(out)))
    print("KERNEL_OK")
</pallas_src>

<mosaic_0001>
module attributes {stable_mosaic.version = 11 : i64} {
  func.func @_mm_kernel(%arg0: i32, %arg1: i32, %arg2: i32, %arg3: memref<512x128xbf16, #tpu.memory_space<vmem>>, %arg4: memref<128x128xbf16, #tpu.memory_space<vmem>>, %arg5: memref<1x128xf32, #tpu.memory_space<vmem>>, %arg6: memref<512x128xbf16, #tpu.memory_space<vmem>>, %arg7: memref<512x128xf32, #tpu.memory_space<vmem>>) attributes {dimension_semantics = [#tpu.dimension_semantics<parallel>, #tpu.dimension_semantics<parallel>, #tpu.dimension_semantics<arbitrary>], iteration_bounds = array<i64: 8, 1, 1>, scalar_prefetch = 0 : i64, scratch_operands = 1 : i64, tpu.core_type = #tpu.core_type<tc>, window_params = [{transform_indices = @transform_0, window_bounds = array<i64: 512, 128>}, {transform_indices = @transform_1, window_bounds = array<i64: 128, 128>}, {transform_indices = @transform_2, window_bounds = array<i64: 1, 128>}, {transform_indices = @transform_3, window_bounds = array<i64: 512, 128>}]} {
    %c0_i32 = arith.constant 0 : i32
    %0 = arith.cmpi eq, %arg2, %c0_i32 : i32
    %1 = arith.extui %0 : i1 to i32
    %c0_i32_0 = arith.constant 0 : i32
    %2 = arith.cmpi ne, %1, %c0_i32_0 : i32
    scf.if %2 {
      %cst_10 = arith.constant 0.000000e+00 : f32
      %12 = vector.broadcast %cst_10 : f32 to vector<512x128xf32>
      %c0_11 = arith.constant 0 : index
      %c0_12 = arith.constant 0 : index
      %13 = vector.load %arg7[%c0_11, %c0_12] : memref<512x128xf32, #tpu.memory_space<vmem>>, vector<512x128xf32>
      tpu.vector_store %arg7[%c0_11, %c0_12], %12 {strides = array<i32>} : memref<512x128xf32, #tpu.memory_space<vmem>>, vector<512x128xf32>,
    } else {
    }
    %c0 = arith.constant 0 : index
    %c0_1 = arith.constant 0 : index
    %3 = vector.load %arg7[%c0, %c0_1] : memref<512x128xf32, #tpu.memory_space<vmem>>, vector<512x128xf32>
    %c0_2 = arith.constant 0 : index
    %c0_3 = arith.constant 0 : index
    %4 = vector.load %arg3[%c0_2, %c0_3] : memref<512x128xbf16, #tpu.memory_space<vmem>>, vector<512x128xbf16>
    %c0_4 = arith.constant 0 : index
    %c0_5 = arith.constant 0 : index
    %5 = vector.load %arg4[%c0_4, %c0_5] : memref<128x128xbf16, #tpu.memory_space<vmem>>, vector<128x128xbf16>
    %cst = arith.constant dense<0.000000e+00> : vector<512x128xf32>
    %6 = tpu.matmul %4, %5, %cst {dimension_numbers = #tpu.dot_dimension_numbers<[1], [0], [0], [1], [0, 0, 1, 1], [], []>} : vector<512x128xbf16>, vector<128x128xbf16>, vector<512x128xf32> -> vector<512x128xf32>
    %7 = arith.addf %3, %6 : vector<512x128xf32>
    %c0_6 = arith.constant 0 : index
    %c0_7 = arith.constant 0 : index
    %8 = vector.load %arg7[%c0_6, %c0_7] : memref<512x128xf32, #tpu.memory_space<vmem>>, vector<512x128xf32>
    tpu.vector_store %arg7[%c0_6, %c0_7], %7 {strides = array<i32>} : memref<512x128xf32, #tpu.memory_space<vmem>>, vector<512x128xf32>,
    %c0_i32_8 = arith.constant 0 : i32
    %9 = arith.cmpi eq, %arg2, %c0_i32_8 : i32
    %10 = arith.extui %9 : i1 to i32
    %c0_i32_9 = arith.constant 0 : i32
    %11 = arith.cmpi ne, %10, %c0_i32_9 : i32
    scf.if %11 {
      %c0_10 = arith.constant 0 : index
      %c0_11 = arith.constant 0 : index
      %12 = vector.load %arg7[%c0_10, %c0_11] : memref<512x128xf32, #tpu.memory_space<vmem>>, vector<512x128xf32>
      %c0_12 = arith.constant 0 : index
      %c0_13 = arith.constant 0 : index
      %13 = vector.load %arg5[%c0_12, %c0_13] : memref<1x128xf32, #tpu.memory_space<vmem>>, vector<1x128xf32>
      %14 = vector.broadcast %13 : vector<1x128xf32> to vector<512x128xf32>
      %15 = arith.addf %12, %14 : vector<512x128xf32>
      %cst_14 = arith.constant 0.000000e+00 : f32
      %16 = vector.broadcast %cst_14 : f32 to vector<512x128xf32>
      %17 = arith.maximumf %15, %16 : vector<512x128xf32>
      %18 = arith.truncf %17 : vector<512x128xf32> to vector<512x128xbf16>
      %c0_15 = arith.constant 0 : index
      %c0_16 = arith.constant 0 : index
      %19 = vector.load %arg6[%c0_15, %c0_16] : memref<512x128xbf16, #tpu.memory_space<vmem>>, vector<512x128xbf16>
      tpu.vector_store %arg6[%c0_15, %c0_16], %18 {strides = array<i32>} : memref<512x128xbf16, #tpu.memory_space<vmem>>, vector<512x128xbf16>,
    } else {
    }
    return
  }
  func.func @transform_0(%arg0: i32, %arg1: i32, %arg2: i32) -> (i32, i32) {
    %c0_i32 = arith.constant 0 : i32
    return %arg0, %arg2 : i32, i32
  }
  func.func @transform_1(%arg0: i32, %arg1: i32, %arg2: i32) -> (i32, i32) {
    %c0_i32 = arith.constant 0 : i32
    return %arg2, %arg1 : i32, i32
  }
  func.func @transform_2(%arg0: i32, %arg1: i32, %arg2: i32) -> (i32, i32) {
    %c0_i32 = arith.constant 0 : i32
    %c0_i32_0 = arith.constant 0 : i32
    return %c0_i32, %arg1 : i32, i32
  }
  func.func @transform_3(%arg0: i32, %arg1: i32, %arg2: i32) -> (i32, i32) {
    %c0_i32 = arith.constant 0 : i32
    return %arg0, %arg1 : i32, i32
  }
}

</mosaic_0001>

<bundles_post_ra>
// kernel: matmul_bias_act.1
= control target key start
LH: loop header
LB: loop body
LE: loop exit
PB: predicated region body
PF: predicated region fallthrough
CT: control target
= control target key end

     0   :  { %s1943_s12 = smov 0   ;;  %s1945_s13 = smov 0   ;;  %s2147_s0 = inlined_call_operand.vmem [shape: bf16[4096,128], index: 0, kind: input, shape index: {}]   ;;  %s2148_s1 = inlined_call_operand.vmem [shape: bf16[128,128], index: 1, kind: input, shape index: {}]   ;;  %s2149_s2 = inlined_call_operand.vmem [shape: f32[1,128], index: 2, kind: input, shape index: {}]   ;;  %s2150_s3 = inlined_call_operand.vmem [shape: bf16[4096,128], index: 3, kind: output, shape index: {}]  }
   0x1   :  { %s1947_s14 = smov 0  }
   0x2 LB: > { %s32_s15 = sadd.s32 1, %s1917_s13  ;;  %p1452_p0 = scmp.ge.s32.totalorder %s1921_s14, 1  ;;  %s1921_s14 = sphi %s1947_s14, %s13_s14   ;;  %s1917_s13 = sphi %s1945_s13, %s2152_s13   ;;  %s1913_s12 = sphi %s1943_s12, %s2151_s12  }
   0x3   : > { %p34_p1 = scmp.ge.s32.totalorder %s32_s15, 8  ;;  %p188_p2 = scmp.lt.s32.totalorder %s1921_s14, 9 }
   0x5   : > { %s2154_s15 = smov (%p34_p1, %s32_s15), 0  ;;  %p189_p3 = pnand %p1452_p0, %p188_p2 }
   0x6   : > { %s1453_s24 = sshll.u32 (!%p189_p3), %s1913_s12, 6 }
   0x7   : > { %192 = sbr.rel (%p189_p3) target bundleno = 305 (0x131), region = 32  ;;  %p230_p4 = scmp.lt.s32.totalorder (!%p189_p3), %s1453_s24, 511 }
   0xc   : > { %v1658_v0 = vld [vmem:[%s2148_s1 + $0x38] sm:$0xff]  ;;  %v1657_v1 = vld [vmem:[%s2148_s1 + $0x30] sm:$0xff]  ;;  %v1656_v2 = vld [vmem:[%s2148_s1 + $0x28] sm:$0xff]  ;;  %s2156_s24 = smov (!%p230_p4, %s1453_s24), 511 }
   0xd   : > { %711 = vmatpush.bf16.msra.mxu0 %v1658_v0  ;;  %1850 = vmatpush.bf16.msra.mxu1 %v1658_v0  ;;  %v1655_v3 = vld [vmem:[%s2148_s1 + $0x20] sm:$0xff]  ;;  %v1654_v4 = vld [vmem:[%s2148_s1 + $0x18] sm:$0xff]  ;;  %v1653_v5 = vld [vmem:[%s2148_s1 + $0x10] sm:$0xff]  ;;  %s1454_s4 = sshll.u32 %s2156_s24, 2 }
   0xe   : > { %1851 = vmatpush.bf16.msra.mxu2 %v1658_v0  ;;  %1852 = vmatpush.bf16.msra.mxu3 %v1658_v0  ;;  %v1652_v6 = vld [vmem:[%s2148_s1 + $0x8] sm:$0xff]  ;;  %v1651_v7 = vld [vmem:[%s2148_s1] sm:$0xff]  ;;  %s1996_s9 = scalar_lea.vmem %s2147_s0, %s1454_s4  ;;  %s2044_s17 = scalar_lea.vmem %s2150_s3, %s1454_s4 }
   0xf   : > { %v1619_v8 = vld [vmem:[%s1996_s9] sm:$0xff]  ;;  %v1620_v12 = vld [vmem:[%s1996_s9 + $0x8] sm:$0xff]  ;;  %v1621_v16 = vld [vmem:[%s1996_s9 + $0x10] sm:$0xff] }
  0x10   : > { %v1627_v9 = vld [vmem:[%s1996_s9 + $0x40] sm:$0xff]  ;;  %v1628_v13 = vld [vmem:[%s1996_s9 + $0x48] sm:$0xff]  ;;  %v1629_v17 = vld [vmem:[%s1996_s9 + $0x50] sm:$0xff] }
  0x11   : > { %712 = vmatpush.bf16.msra.mxu0 %v1657_v1  ;;  %1853 = vmatpush.bf16.msra.mxu1 %v1657_v1  ;;  %v1635_v10 = vld [vmem:[%s1996_s9 + $0x80] sm:$0xff]  ;;  %v1636_v14 = vld [vmem:[%s1996_s9 + $0x88] sm:$0xff]  ;;  %v1637_v18 = vld [vmem:[%s1996_s9 + $0x90] sm:$0xff] }
  0x12   : > { %1854 = vmatpush.bf16.msra.mxu2 %v1657_v1  ;;  %1855 = vmatpush.bf16.msra.mxu3 %v1657_v1  ;;  %v1643_v11 = vld [vmem:[%s1996_s9 + $0xc0] sm:$0xff]  ;;  %v1644_v15 = vld [vmem:[%s1996_s9 + $0xc8] sm:$0xff]  ;;  %v1645_v19 = vld [vmem:[%s1996_s9 + $0xd0] sm:$0xff] }
  0x13   : > { %v1622_v20 = vld [vmem:[%s1996_s9 + $0x18] sm:$0xff]  ;;  %v1623_v24 = vld [vmem:[%s1996_s9 + $0x20] sm:$0xff]  ;;  %v1624_v28 = vld [vmem:[%s1996_s9 + $0x28] sm:$0xff] }
  0x14   : > { %v1630_v21 = vld [vmem:[%s1996_s9 + $0x58] sm:$0xff]  ;;  %v1631_v25 = vld [vmem:[%s1996_s9 + $0x60] sm:$0xff]  ;;  %v1632_v29 = vld [vmem:[%s1996_s9 + $0x68] sm:$0xff] }
  0x15   : > { %713 = vmatpush.bf16.msra.mxu0 %v1656_v2  ;;  %1856 = vmatpush.bf16.msra.mxu1 %v1656_v2  ;;  %v1638_v22 = vld [vmem:[%s1996_s9 + $0x98] sm:$0xff]  ;;  %v1639_v26 = vld [vmem:[%s1996_s9 + $0xa0] sm:$0xff]  ;;  %v1640_v30 = vld [vmem:[%s1996_s9 + $0xa8] sm:$0xff] }
  0x16   : > { %1857 = vmatpush.bf16.msra.mxu2 %v1656_v2  ;;  %1858 = vmatpush.bf16.msra.mxu3 %v1656_v2  ;;  %v1646_v23 = vld [vmem:[%s1996_s9 + $0xd8] sm:$0xff]  ;;  %v1647_v27 = vld [vmem:[%s1996_s9 + $0xe0] sm:$0xff]  ;;  %v1648_v31 = vld [vmem:[%s1996_s9 + $0xe8] sm:$0xff] }
  0x17   : > { %v1625_v32 = vld [vmem:[%s1996_s9 + $0x30] sm:$0xff]  ;;  %v1626_v36 = vld [vmem:[%s1996_s9 + $0x38] sm:$0xff]  ;;  %v2033_v42 = vld [vmem:[%s2149_s2] ss:$0 sm:$0xff] }
  0x18   : > { %v1633_v33 = vld [vmem:[%s1996_s9 + $0x70] sm:$0xff]  ;;  %v1634_v37 = vld [vmem:[%s1996_s9 + $0x78] sm:$0xff] }
  0x19   : > { %714 = vmatpush.bf16.msra.mxu0 %v1655_v3  ;;  %1859 = vmatpush.bf16.msra.mxu1 %v1655_v3  ;;  %v1641_v34 = vld [vmem:[%s1996_s9 + $0xb0] sm:$0xff]  ;;  %v1642_v38 = vld [vmem:[%s1996_s9 + $0xb8] sm:$0xff] }
  0x1a   : > { %1860 = vmatpush.bf16.msra.mxu2 %v1655_v3  ;;  %1861 = vmatpush.bf16.msra.mxu3 %v1655_v3  ;;  %v1649_v35 = vld [vmem:[%s1996_s9 + $0xf0] sm:$0xff]  ;;  %v1650_v39 = vld [vmem:[%s1996_s9 + $0xf8] sm:$0xff] }
  0x1d   : > { %715 = vmatpush.bf16.msra.mxu0 %v1654_v4  ;;  %1862 = vmatpush.bf16.msra.mxu1 %v1654_v4 }
  0x1e   : > { %1863 = vmatpush.bf16.msra.mxu2 %v1654_v4  ;;  %1864 = vmatpush.bf16.msra.mxu3 %v1654_v4 }
  0x21   : > { %716 = vmatpush.bf16.msra.mxu0 %v1653_v5  ;;  %1865 = vmatpush.bf16.msra.mxu1 %v1653_v5 }
  0x22   : > { %1866 = vmatpush.bf16.msra.mxu2 %v1653_v5  ;;  %1867 = vmatpush.bf16.msra.mxu3 %v1653_v5 }
  0x25   : > { %717 = vmatpush.bf16.msra.mxu0 %v1652_v6  ;;  %1868 = vmatpush.bf16.msra.mxu1 %v1652_v6 }
  0x26   : > { %1869 = vmatpush.bf16.msra.mxu2 %v1652_v6  ;;  %1870 = vmatpush.bf16.msra.mxu3 %v1652_v6 }
  0x29   : > { %718 = vmatpush.bf16.msra.mxu0 %v1651_v7  ;;  %1871 = vmatpush.bf16.msra.mxu1 %v1651_v7 }
  0x2a   : > { %1872 = vmatpush.bf16.msra.mxu2 %v1651_v7  ;;  %1873 = vmatpush.bf16.msra.mxu3 %v1651_v7 }
  0x2c   : > { %719 = vmatmul.bf16.vlgmr.msra.gmra.mxu0 %v1619_v8  ;;  %759 = vmatmul.bf16.vlgmr.msra.gmra.mxu1 %v1627_v9 }
  0x2d   : > { %799 = vmatmul.bf16.vlgmr.msra.gmra.mxu2 %v1635_v10  ;;  %839 = vmatmul.bf16.vlgmr.msra.gmra.mxu3 %v1643_v11 }
  0x3c   : > { %724 = vmatmul.bf16.gmra.mxu0 %v1620_v12  ;;  %764 = vmatmul.bf16.gmra.mxu1 %v1628_v13 }
  0x3d   : > { %804 = vmatmul.bf16.gmra.mxu2 %v1636_v14  ;;  %844 = vmatmul.bf16.gmra.mxu3 %v1644_v15 }
  0x4c   : > { %729 = vmatmul.bf16.gmra.mxu0 %v1621_v16  ;;  %769 = vmatmul.bf16.gmra.mxu1 %v1629_v17 }
  0x4d   : > { %809 = vmatmul.bf16.gmra.mxu2 %v1637_v18  ;;  %849 = vmatmul.bf16.gmra.mxu3 %v1645_v19 }
  0x5c   : > { %734 = vmatmul.bf16.gmra.mxu0 %v1622_v20  ;;  %774 = vmatmul.bf16.gmra.mxu1 %v1630_v21 }
  0x5d   : > { %814 = vmatmul.bf16.gmra.mxu2 %v1638_v22  ;;  %854 = vmatmul.bf16.gmra.mxu3 %v1646_v23 }
  0x6c   : > { %739 = vmatmul.bf16.gmra.mxu0 %v1623_v24  ;;  %779 = vmatmul.bf16.gmra.mxu1 %v1631_v25 }
  0x6d   : > { %819 = vmatmul.bf16.gmra.mxu2 %v1639_v26  ;;  %859 = vmatmul.bf16.gmra.mxu3 %v1647_v27 }
  0x7c   : > { %744 = vmatmul.bf16.gmra.mxu0 %v1624_v28  ;;  %784 = vmatmul.bf16.gmra.mxu1 %v1632_v29 }
  0x7d   : > { %824 = vmatmul.bf16.gmra.mxu2 %v1640_v30  ;;  %864 = vmatmul.bf16.gmra.mxu3 %v1648_v31 }
  0x8c   : > { %749 = vmatmul.bf16.gmra.mxu0 %v1625_v32  ;;  %789 = vmatmul.bf16.gmra.mxu1 %v1633_v33 }
  0x8d   : > { %829 = vmatmul.bf16.gmra.mxu2 %v1641_v34  ;;  %869 = vmatmul.bf16.gmra.mxu3 %v1649_v35 }
  0x9c   : > { %754 = vmatmul.bf16.gmra.mxu0 %v1626_v36  ;;  %794 = vmatmul.bf16.gmra.mxu1 %v1634_v37 }
  0x9d   : > { %834 = vmatmul.bf16.gmra.mxu2 %v1642_v38  ;;  %874 = vmatmul.bf16.gmra.mxu3 %v1650_v39 }
  0xa9   : > { %v720_v40 = vpop.f32.mrf.mxu0  ;;  %v760_v41 = vpop.f32.mrf.mxu1 }
  0xaa   : > { %v1079_v43 = vadd.f32 %v2033_v42, %v720_v40  ;;  %v1095_v44 = vadd.f32 %v2033_v42, %v760_v41 }
  0xac   : > { %v1143_v51 = vmax.f32 %v1079_v43, 0.0  ;;  %v1159_v52 = vmax.f32 %v1095_v44, 0.0 }
  0xb0   : > { %v800_v45 = vpop.f32.mrf.mxu2  ;;  %v840_v46 = vpop.f32.mrf.mxu3 }
  0xb1   : > { %v722_v47 = vpop.f32.mrf.mxu0  ;;  %v762_v48 = vpop.f32.mrf.mxu1  ;;  %v1111_v57 = vadd.f32 %v2033_v42, %v800_v45  ;;  %v1127_v58 = vadd.f32 %v2033_v42, %v840_v46 }
  0xb2   : > { %v1080_v49 = vadd.f32 %v2033_v42, %v722_v47  ;;  %v1096_v50 = vadd.f32 %v2033_v42, %v762_v48 }
  0xb3   : > { %v1175_v1 = vmax.f32 %v1111_v57, 0.0  ;;  %v1191_v2 = vmax.f32 %v1127_v58, 0.0 }
  0xb4   : > { %v1144_v53 = vmax.f32 %v1080_v49, 0.0  ;;  %v1160_v54 = vmax.f32 %v1096_v50, 0.0 }
  0xb6   : > { %v1662_v55 = vpack.c.bf16 %v1144_v53, %v1143_v51  ;;  %v1702_v56 = vpack.c.bf16 %v1160_v54, %v1159_v52 }
  0xb8   : > { %1663 = vst [vmem:[%s2044_s17] sm:$0xff] %v1662_v55   ;;  %v802_v59 = vpop.f32.mrf.mxu2  ;;  %v842_v60 = vpop.f32.mrf.mxu3 }
  0xb9   : > { %1826 = vst [vmem:[%s2044_s17 + $0x40] sm:$0xff] %v1702_v56   ;;  %v1112_v61 = vadd.f32 %v2033_v42, %v802_v59  ;;  %v1128_v62 = vadd.f32 %v2033_v42, %v842_v60  ;;  %v725_v63 = vpop.f32.mrf.mxu0  ;;  %v765_v0 = vpop.f32.mrf.mxu1 }
  0xba   : > { %v1081_v7 = vadd.f32 %v2033_v42, %v725_v63  ;;  %v1097_v8 = vadd.f32 %v2033_v42, %v765_v0 }
  0xbb   : > { %v1176_v3 = vmax.f32 %v1112_v61, 0.0  ;;  %v1192_v4 = vmax.f32 %v1128_v62, 0.0 }
  0xbc   : > { %v1145_v15 = vmax.f32 %v1081_v7, 0.0  ;;  %v1161_v16 = vmax.f32 %v1097_v8, 0.0 }
  0xbd   : > { %v1742_v5 = vpack.c.bf16 %v1176_v3, %v1175_v1  ;;  %v1782_v6 = vpack.c.bf16 %v1192_v4, %v1191_v2 }
  0xbf   : > { %1834 = vst [vmem:[%s2044_s17 + $0x80] sm:$0xff] %v1742_v5  }
  0xc0   : > { %1842 = vst [vmem:[%s2044_s17 + $0xc0] sm:$0xff] %v1782_v6   ;;  %v805_v9 = vpop.f32.mrf.mxu2  ;;  %v845_v10 = vpop.f32.mrf.mxu3 }
  0xc1   : > { %v727_v11 = vpop.f32.mrf.mxu0  ;;  %v767_v12 = vpop.f32.mrf.mxu1  ;;  %v1113_v21 = vadd.f32 %v2033_v42, %v805_v9  ;;  %v1129_v22 = vadd.f32 %v2033_v42, %v845_v10 }
  0xc2   : > { %v1082_v13 = vadd.f32 %v2033_v42, %v727_v11  ;;  %v1098_v14 = vadd.f32 %v2033_v42, %v767_v12 }
  0xc3   : > { %v1177_v29 = vmax.f32 %v1113_v21, 0.0  ;;  %v1193_v30 = vmax.f32 %v1129_v22, 0.0 }
  0xc4   : > { %v1146_v17 = vmax.f32 %v1082_v13, 0.0  ;;  %v1162_v18 = vmax.f32 %v1098_v14, 0.0 }
  0xc6   : > { %v1667_v19 = vpack.c.bf16 %v1146_v17, %v1145_v15  ;;  %v1707_v20 = vpack.c.bf16 %v1162_v18, %v1161_v16 }
  0xc8   : > { %1819 = vst [vmem:[%s2044_s17 + $0x8] sm:$0xff] %v1667_v19   ;;  %v807_v23 = vpop.f32.mrf.mxu2  ;;  %v847_v24 = vpop.f32.mrf.mxu3 }
  0xc9   : > { %1827 = vst [vmem:[%s2044_s17 + $0x48] sm:$0xff] %v1707_v20   ;;  %v1114_v25 = vadd.f32 %v2033_v42, %v807_v23  ;;  %v1130_v26 = vadd.f32 %v2033_v42, %v847_v24  ;;  %v730_v27 = vpop.f32.mrf.mxu0  ;;  %v770_v28 = vpop.f32.mrf.mxu1 }
  0xca   : > { %v1083_v35 = vadd.f32 %v2033_v42, %v730_v27  ;;  %v1099_v36 = vadd.f32 %v2033_v42, %v770_v28 }
  0xcb   : > { %v1178_v31 = vmax.f32 %v1114_v25, 0.0  ;;  %v1194_v32 = vmax.f32 %v1130_v26, 0.0 }
  0xcc   : > { %v1147_v44 = vmax.f32 %v1083_v35, 0.0  ;;  %v1163_v45 = vmax.f32 %v1099_v36, 0.0 }
  0xcd   : > { %v1747_v33 = vpack.c.bf16 %v1178_v31, %v1177_v29  ;;  %v1787_v34 = vpack.c.bf16 %v1194_v32, %v1193_v30 }
  0xcf   : > { %1835 = vst [vmem:[%s2044_s17 + $0x88] sm:$0xff] %v1747_v33  }
  0xd0   : > { %1843 = vst [vmem:[%s2044_s17 + $0xc8] sm:$0xff] %v1787_v34   ;;  %v810_v37 = vpop.f32.mrf.mxu2  ;;  %v850_v38 = vpop.f32.mrf.mxu3 }
  0xd1   : > { %v732_v39 = vpop.f32.mrf.mxu0  ;;  %v772_v40 = vpop.f32.mrf.mxu1  ;;  %v1115_v50 = vadd.f32 %v2033_v42, %v810_v37  ;;  %v1131_v51 = vadd.f32 %v2033_v42, %v850_v38 }
  0xd2   : > { %v1084_v41 = vadd.f32 %v2033_v42, %v732_v39  ;;  %v1100_v43 = vadd.f32 %v2033_v42, %v772_v40 }
  0xd3   : > { %v1179_v58 = vmax.f32 %v1115_v50, 0.0  ;;  %v1195_v59 = vmax.f32 %v1131_v51, 0.0 }
  0xd4   : > { %v1148_v46 = vmax.f32 %v1084_v41, 0.0  ;;  %v1164_v47 = vmax.f32 %v1100_v43, 0.0 }
  0xd6   : > { %v1672_v48 = vpack.c.bf16 %v1148_v46, %v1147_v44  ;;  %v1712_v49 = vpack.c.bf16 %v1164_v47, %v1163_v45 }
  0xd8   : > { %1820 = vst [vmem:[%s2044_s17 + $0x10] sm:$0xff] %v1672_v48   ;;  %v812_v52 = vpop.f32.mrf.mxu2  ;;  %v852_v53 = vpop.f32.mrf.mxu3 }
  0xd9   : > { %1828 = vst [vmem:[%s2044_s17 + $0x50] sm:$0xff] %v1712_v49   ;;  %v1116_v54 = vadd.f32 %v2033_v42, %v812_v52  ;;  %v1132_v55 = vadd.f32 %v2033_v42, %v852_v53  ;;  %v735_v56 = vpop.f32.mrf.mxu0  ;;  %v775_v57 = vpop.f32.mrf.mxu1 }
  0xda   : > { %v1085_v0 = vadd.f32 %v2033_v42, %v735_v56  ;;  %v1101_v1 = vadd.f32 %v2033_v42, %v775_v57 }
  0xdb   : > { %v1180_v60 = vmax.f32 %v1116_v54, 0.0  ;;  %v1196_v61 = vmax.f32 %v1132_v55, 0.0 }
  0xdc   : > { %v1149_v8 = vmax.f32 %v1085_v0, 0.0  ;;  %v1165_v9 = vmax.f32 %v1101_v1, 0.0 }
  0xdd   : > { %v1752_v62 = vpack.c.bf16 %v1180_v60, %v1179_v58  ;;  %v1792_v63 = vpack.c.bf16 %v1196_v61, %v1195_v59 }
  0xdf   : > { %1836 = vst [vmem:[%s2044_s17 + $0x90] sm:$0xff] %v1752_v62  }
  0xe0   : > { %1844 = vst [vmem:[%s2044_s17 + $0xd0] sm:$0xff] %v1792_v63   ;;  %v815_v2 = vpop.f32.mrf.mxu2  ;;  %v855_v3 = vpop.f32.mrf.mxu3 }
  0xe1   : > { %v737_v4 = vpop.f32.mrf.mxu0  ;;  %v777_v5 = vpop.f32.mrf.mxu1  ;;  %v1117_v14 = vadd.f32 %v2033_v42, %v815_v2  ;;  %v1133_v15 = vadd.f32 %v2033_v42, %v855_v3 }
  0xe2   : > { %v1086_v6 = vadd.f32 %v2033_v42, %v737_v4  ;;  %v1102_v7 = vadd.f32 %v2033_v42, %v777_v5 }
  0xe3   : > { %v1181_v22 = vmax.f32 %v1117_v14, 0.0  ;;  %v1197_v23 = vmax.f32 %v1133_v15, 0.0 }
  0xe4   : > { %v1150_v10 = vmax.f32 %v1086_v6, 0.0  ;;  %v1166_v11 = vmax.f32 %v1102_v7, 0.0 }
  0xe6   : > { %v1677_v12 = vpack.c.bf16 %v1150_v10, %v1149_v8  ;;  %v1717_v13 = vpack.c.bf16 %v1166_v11, %v1165_v9 }
  0xe8   : > { %1821 = vst [vmem:[%s2044_s17 + $0x18] sm:$0xff] %v1677_v12   ;;  %v817_v16 = vpop.f32.mrf.mxu2  ;;  %v857_v17 = vpop.f32.mrf.mxu3 }
  0xe9   : > { %1829 = vst [vmem:[%s2044_s17 + $0x58] sm:$0xff] %v1717_v13   ;;  %v1118_v18 = vadd.f32 %v2033_v42, %v817_v16  ;;  %v1134_v19 = vadd.f32 %v2033_v42, %v857_v17  ;;  %v740_v20 = vpop.f32.mrf.mxu0  ;;  %v780_v21 = vpop.f32.mrf.mxu1 }
  0xea   : > { %v1087_v28 = vadd.f32 %v2033_v42, %v740_v20  ;;  %v1103_v29 = vadd.f32 %v2033_v42, %v780_v21 }
  0xeb   : > { %v1182_v24 = vmax.f32 %v1118_v18, 0.0  ;;  %v1198_v25 = vmax.f32 %v1134_v19, 0.0 }
  0xec   : > { %v1151_v36 = vmax.f32 %v1087_v28, 0.0  ;;  %v1167_v37 = vmax.f32 %v1103_v29, 0.0 }
  0xed   : > { %v1757_v26 = vpack.c.bf16 %v1182_v24, %v1181_v22  ;;  %v1797_v27 = vpack.c.bf16 %v1198_v25, %v1197_v23 }
  0xef   : > { %1837 = vst [vmem:[%s2044_s17 + $0x98] sm:$0xff] %v1757_v26  }
  0xf0   : > { %1845 = vst [vmem:[%s2044_s17 + $0xd8] sm:$0xff] %v1797_v27   ;;  %v820_v30 = vpop.f32.mrf.mxu2  ;;  %v860_v31 = vpop.f32.mrf.mxu3 }
  0xf1   : > { %v742_v32 = vpop.f32.mrf.mxu0  ;;  %v782_v33 = vpop.f32.mrf.mxu1  ;;  %v1119_v43 = vadd.f32 %v2033_v42, %v820_v30  ;;  %v1135_v44 = vadd.f32 %v2033_v42, %v860_v31 }
  0xf2   : > { %v1088_v34 = vadd.f32 %v2033_v42, %v742_v32  ;;  %v1104_v35 = vadd.f32 %v2033_v42, %v782_v33 }
  0xf3   : > { %v1183_v51 = vmax.f32 %v1119_v43, 0.0  ;;  %v1199_v52 = vmax.f32 %v1135_v44, 0.0 }
  0xf4   : > { %v1152_v38 = vmax.f32 %v1088_v34, 0.0  ;;  %v1168_v39 = vmax.f32 %v1104_v35, 0.0 }
  0xf6   : > { %v1682_v40 = vpack.c.bf16 %v1152_v38, %v1151_v36  ;;  %v1722_v41 = vpack.c.bf16 %v1168_v39, %v1167_v37 }
  0xf8   : > { %1822 = vst [vmem:[%s2044_s17 + $0x20] sm:$0xff] %v1682_v40   ;;  %v822_v45 = vpop.f32.mrf.mxu2  ;;  %v862_v46 = vpop.f32.mrf.mxu3 }
  0xf9   : > { %1830 = vst [vmem:[%s2044_s17 + $0x60] sm:$0xff] %v1722_v41   ;;  %v1120_v47 = vadd.f32 %v2033_v42, %v822_v45  ;;  %v1136_v48 = vadd.f32 %v2033_v42, %v862_v46  ;;  %v745_v49 = vpop.f32.mrf.mxu0  ;;  %v785_v50 = vpop.f32.mrf.mxu1 }
  0xfa   : > { %v1089_v57 = vadd.f32 %v2033_v42, %v745_v49  ;;  %v1105_v58 = vadd.f32 %v2033_v42, %v785_v50 }
  0xfb   : > { %v1184_v53 = vmax.f32 %v1120_v47, 0.0  ;;  %v1200_v54 = vmax.f32 %v1136_v48, 0.0 }
  0xfc   : > { %v1153_v1 = vmax.f32 %v1089_v57, 0.0  ;;  %v1169_v2 = vmax.f32 %v1105_v58, 0.0 }
  0xfd   : > { %v1762_v55 = vpack.c.bf16 %v1184_v53, %v1183_v51  ;;  %v1802_v56 = vpack.c.bf16 %v1200_v54, %v1199_v52 }
  0xff   : > { %1838 = vst [vmem:[%s2044_s17 + $0xa0] sm:$0xff] %v1762_v55  }
 0x100   : > { %1846 = vst [vmem:[%s2044_s17 + $0xe0] sm:$0xff] %v1802_v56   ;;  %v825_v59 = vpop.f32.mrf.mxu2  ;;  %v865_v60 = vpop.f32.mrf.mxu3 }
 0x101   : > { %v747_v61 = vpop.f32.mrf.mxu0  ;;  %v787_v62 = vpop.f32.mrf.mxu1  ;;  %v1121_v7 = vadd.f32 %v2033_v42, %v825_v59  ;;  %v1137_v8 = vadd.f32 %v2033_v42, %v865_v60 }
 0x102   : > { %v1090_v63 = vadd.f32 %v2033_v42, %v747_v61  ;;  %v1106_v0 = vadd.f32 %v2033_v42, %v787_v62 }
 0x103   : > { %v1185_v15 = vmax.f32 %v1121_v7, 0.0  ;;  %v1201_v16 = vmax.f32 %v1137_v8, 0.0 }
 0x104   : > { %v1154_v3 = vmax.f32 %v1090_v63, 0.0  ;;  %v1170_v4 = vmax.f32 %v1106_v0, 0.0 }
 0x106   : > { %v1687_v5 = vpack.c.bf16 %v1154_v3, %v1153_v1  ;;  %v1727_v6 = vpack.c.bf16 %v1170_v4, %v1169_v2 }
 0x108   : > { %1823 = vst [vmem:[%s2044_s17 + $0x28] sm:$0xff] %v1687_v5   ;;  %v827_v9 = vpop.f32.mrf.mxu2  ;;  %v867_v10 = vpop.f32.mrf.mxu3 }
 0x109   : > { %1831 = vst [vmem:[%s2044_s17 + $0x68] sm:$0xff] %v1727_v6   ;;  %v1122_v11 = vadd.f32 %v2033_v42, %v827_v9  ;;  %v1138_v12 = vadd.f32 %v2033_v42, %v867_v10  ;;  %v750_v13 = vpop.f32.mrf.mxu0  ;;  %v790_v14 = vpop.f32.mrf.mxu1 }
 0x10a   : > { %v1091_v21 = vadd.f32 %v2033_v42, %v750_v13  ;;  %v1107_v22 = vadd.f32 %v2033_v42, %v790_v14 }
 0x10b   : > { %v1186_v17 = vmax.f32 %v1122_v11, 0.0  ;;  %v1202_v18 = vmax.f32 %v1138_v12, 0.0 }
 0x10c   : > { %v1155_v29 = vmax.f32 %v1091_v21, 0.0  ;;  %v1171_v30 = vmax.f32 %v1107_v22, 0.0 }
 0x10d   : > { %v1767_v19 = vpack.c.bf16 %v1186_v17, %v1185_v15  ;;  %v1807_v20 = vpack.c.bf16 %v1202_v18, %v1201_v16 }
 0x10f   : > { %1839 = vst [vmem:[%s2044_s17 + $0xa8] sm:$0xff] %v1767_v19  }
 0x110   : > { %1847 = vst [vmem:[%s2044_s17 + $0xe8] sm:$0xff] %v1807_v20   ;;  %v830_v23 = vpop.f32.mrf.mxu2  ;;  %v870_v24 = vpop.f32.mrf.mxu3 }
 0x111   : > { %v752_v25 = vpop.f32.mrf.mxu0  ;;  %v792_v26 = vpop.f32.mrf.mxu1  ;;  %v1123_v35 = vadd.f32 %v2033_v42, %v830_v23  ;;  %v1139_v36 = vadd.f32 %v2033_v42, %v870_v24 }
 0x112   : > { %v1092_v27 = vadd.f32 %v2033_v42, %v752_v25  ;;  %v1108_v28 = vadd.f32 %v2033_v42, %v792_v26 }
 0x113   : > { %v1187_v44 = vmax.f32 %v1123_v35, 0.0  ;;  %v1203_v45 = vmax.f32 %v1139_v36, 0.0 }
 0x114   : > { %v1156_v31 = vmax.f32 %v1092_v27, 0.0  ;;  %v1172_v32 = vmax.f32 %v1108_v28, 0.0 }
 0x116   : > { %v1692_v33 = vpack.c.bf16 %v1156_v31, %v1155_v29  ;;  %v1732_v34 = vpack.c.bf16 %v1172_v32, %v1171_v30 }
 0x118   : > { %1824 = vst [vmem:[%s2044_s17 + $0x30] sm:$0xff] %v1692_v33   ;;  %v832_v37 = vpop.f32.mrf.mxu2  ;;  %v872_v38 = vpop.f32.mrf.mxu3 }
 0x119   : > { %1832 = vst [vmem:[%s2044_s17 + $0x70] sm:$0xff] %v1732_v34   ;;  %v1124_v39 = vadd.f32 %v2033_v42, %v832_v37  ;;  %v1140_v40 = vadd.f32 %v2033_v42, %v872_v38  ;;  %v755_v41 = vpop.f32.mrf.mxu0  ;;  %v795_v43 = vpop.f32.mrf.mxu1 }
 0x11a   : > { %v1093_v50 = vadd.f32 %v2033_v42, %v755_v41  ;;  %v1109_v51 = vadd.f32 %v2033_v42, %v795_v43 }
 0x11b   : > { %v1188_v46 = vmax.f32 %v1124_v39, 0.0  ;;  %v1204_v47 = vmax.f32 %v1140_v40, 0.0 }
 0x11c   : > { %v1157_v58 = vmax.f32 %v1093_v50, 0.0  ;;  %v1173_v59 = vmax.f32 %v1109_v51, 0.0 }
 0x11d   : > { %v1772_v48 = vpack.c.bf16 %v1188_v46, %v1187_v44  ;;  %v1812_v49 = vpack.c.bf16 %v1204_v47, %v1203_v45 }
 0x11f   : > { %1840 = vst [vmem:[%s2044_s17 + $0xb0] sm:$0xff] %v1772_v48  }
 0x120   : > { %1848 = vst [vmem:[%s2044_s17 + $0xf0] sm:$0xff] %v1812_v49   ;;  %v835_v52 = vpop.f32.mrf.mxu2  ;;  %v875_v53 = vpop.f32.mrf.mxu3 }
 0x121   : > { %v757_v54 = vpop.f32.mrf.mxu0  ;;  %v797_v55 = vpop.f32.mrf.mxu1  ;;  %v1125_v0 = vadd.f32 %v2033_v42, %v835_v52  ;;  %v1141_v1 = vadd.f32 %v2033_v42, %v875_v53 }
 0x122   : > { %v1094_v56 = vadd.f32 %v2033_v42, %v757_v54  ;;  %v1110_v57 = vadd.f32 %v2033_v42, %v797_v55 }
 0x123   : > { %v1189_v6 = vmax.f32 %v1125_v0, 0.0  ;;  %v1205_v7 = vmax.f32 %v1141_v1, 0.0 }
 0x124   : > { %v1158_v60 = vmax.f32 %v1094_v56, 0.0  ;;  %v1174_v61 = vmax.f32 %v1110_v57, 0.0 }
 0x126   : > { %v1697_v62 = vpack.c.bf16 %v1158_v60, %v1157_v58  ;;  %v1737_v63 = vpack.c.bf16 %v1174_v61, %v1173_v59 }
 0x128   : > { %1825 = vst [vmem:[%s2044_s17 + $0x38] sm:$0xff] %v1697_v62   ;;  %v837_v2 = vpop.f32.mrf.mxu2  ;;  %v877_v3 = vpop.f32.mrf.mxu3 }
 0x129   : > { %1833 = vst [vmem:[%s2044_s17 + $0x78] sm:$0xff] %v1737_v63   ;;  %v1126_v4 = vadd.f32 %v2033_v42, %v837_v2  ;;  %v1142_v5 = vadd.f32 %v2033_v42, %v877_v3 }
 0x12b   : > { %v1190_v8 = vmax.f32 %v1126_v4, 0.0  ;;  %v1206_v9 = vmax.f32 %v1142_v5, 0.0 }
 0x12d   : > { %v1777_v10 = vpack.c.bf16 %v1190_v8, %v1189_v6  ;;  %v1817_v11 = vpack.c.bf16 %v1206_v9, %v1205_v7 }
 0x12f   : > { %1841 = vst [vmem:[%s2044_s17 + $0xb8] sm:$0xff] %v1777_v10  }
 0x130   : > { %1849 = vst [vmem:[%s2044_s17 + $0xf8] sm:$0xff] %v1817_v11  }
 0x131 PF: > { %s13_s14 = sadd.s32 1, %s1921_s14   ;;  %s2151_s12 = smov %s1917_s13 }
 0x132   : > { %p10_p5 = scmp.ge.s32.totalorder %s13_s14, 10   ;;  %s2152_s13 = smov %s2154_s15 }
 0x134   :  { %12 = sbr.rel (!%p10_p5) target bundleno = 2 (0x2), region = 76 }

</bundles_post_ra>
